<compile_context>
chip_gen: v6e
topology: v6e:2x2x1
jax: 0.10.0
libtpu: 0.0.40
codegen_flags: <defaults>
</compile_context>

<pallas_src>
from functools import partial

import jax
import jax.numpy as jnp
from jax.experimental import pallas as pl
from jax.experimental.pallas import tpu as pltpu

_LANE = 128
# ~2 MiB (f32) per input per pipeline buffer: 2 inputs x 2 buffers + acc stays
# comfortably under VMEM on v5e / v6e / v7x once vmem_limit_bytes is raised.
_MAX_TILE_ELEMS = 512 * 1024


def _mse_kernel(x_ref, t_ref, loss_ref, acc_ref, *, inv_n, rows, tile_rows, mask_rows):
    i = pl.program_id(0)

    @pl.when(i == 0)
    def _init():
        acc_ref[...] = jnp.zeros_like(acc_ref)

    # Elementwise squared difference accumulated into a tile-shaped f32
    # accumulator: the inner loop stays on the VPU.
    d = x_ref[...].astype(jnp.float32) - t_ref[...].astype(jnp.float32)
    sq = d * d
    if mask_rows:
        # Ragged final block: rows beyond the true row count hold unspecified
        # data in the pipelined buffer -> zero them before accumulating.
        row_ids = jax.lax.broadcasted_iota(jnp.int32, sq.shape, 0) + i * tile_rows
        sq = jnp.where(row_ids < rows, sq, 0.0)
    acc_ref[...] += sq

    @pl.when(i == pl.num_programs(0) - 1)
    def _finalize():
        total = jnp.sum(acc_ref[...])  # single full reduce in the epilogue
        loss_ref[...] = jnp.broadcast_to(total * inv_n, (1, 1))


def _choose_layout(n):
    """Pick the widest lane dim that divides n (favor big contiguous DMAs)."""
    for w in (1024, 512, 256, 128):
        if n % w == 0:
            return w, n // w, 0
    # Rare fallback (n not a multiple of 128): zero-pad both operands to a
    # lane multiple; padded diff is 0, and we divide by the true n, so the
    # MSE stays exact.
    w = _LANE
    pad = (-n) % w
    return w, (n + pad) // w, pad


def content_loss_forward(x, target):
    """Returns (input, mse_loss), mirroring ContentLoss.forward semantics."""
    assert x.shape == target.shape, "input and target must have identical shapes"
    n = x.size
    w, rows, pad = _choose_layout(n)

    xf = x.reshape(-1)
    tf = target.reshape(-1)
    if pad:
        xf = jnp.pad(xf, (0, pad))
        tf = jnp.pad(tf, (0, pad))
    xf = xf.reshape(rows, w)
    tf = tf.reshape(rows, w)

    max_rows = max(8, _MAX_TILE_ELEMS // w)
    tile_rows = rows if rows <= max_rows else max_rows
    grid = pl.cdiv(rows, tile_rows)
    mask_rows = (rows % tile_rows) != 0

    # 2 pipeline buffers per input + f32 accumulator + headroom.
    tile_in_bytes = tile_rows * w * (xf.dtype.itemsize + tf.dtype.itemsize)
    acc_bytes = tile_rows * w * 4
    vmem_limit = int(2 * tile_in_bytes + acc_bytes + (4 << 20))

    loss = pl.pallas_call(
        partial(
            _mse_kernel,
            inv_n=1.0 / float(n),
            rows=rows,
            tile_rows=tile_rows,
            mask_rows=mask_rows,
        ),
        out_shape=jax.ShapeDtypeStruct((1, 1), jnp.float32),
        grid_spec=pltpu.PrefetchScalarGridSpec(
            num_scalar_prefetch=0,
            grid=(grid,),
            in_specs=[
                pl.BlockSpec((tile_rows, w), lambda i: (i, 0)),
                pl.BlockSpec((tile_rows, w), lambda i: (i, 0)),
            ],
            out_specs=pl.BlockSpec((1, 1), lambda i: (0, 0)),
            scratch_shapes=[pltpu.VMEM((tile_rows, w), jnp.float32)],
        ),
        compiler_params=pltpu.CompilerParams(
            dimension_semantics=("arbitrary",),  # sequential reduction axis
            vmem_limit_bytes=vmem_limit,
        ),
    )(xf, tf)

    # TODO(synk): on v7x, split the row range over the 2 TensorCores with a
    # leading "parallel" grid axis and per-core partial-sum outputs summed in
    # the wrapper (single shared accumulator would be racy across cores).
    return x, loss[0, 0]


if __name__ == "__main__":
    key = jax.random.PRNGKey(0)
    k_x, k_t, k_x2, k_t2 = jax.random.split(key, 4)

    # Small NCHW shapes consistent with a conv-feature content loss.
    x = jax.random.normal(k_x, (2, 4, 16, 16), dtype=jnp.float32)
    target = jax.random.normal(k_t, (2, 4, 16, 16), dtype=jnp.float32)  # "detached"

    out, loss = content_loss_forward(x, target)
    out, loss = jax.block_until_ready(out), jax.block_until_ready(loss)

    ref_loss = jnp.mean((x - target) ** 2)
    assert jnp.allclose(loss, ref_loss, rtol=1e-5, atol=1e-6), (loss, ref_loss)
    assert jnp.array_equal(out, x)

    # Second check: exercises the multi-step grid + ragged-tail masking path.
    x2 = jax.random.normal(k_x2, (1, 520, 32, 32), dtype=jnp.float32)
    t2 = jax.random.normal(k_t2, (1, 520, 32, 32), dtype=jnp.float32)
    out2, loss2 = content_loss_forward(x2, t2)
    out2, loss2 = jax.block_until_ready(out2), jax.block_until_ready(loss2)
    ref_loss2 = jnp.mean((x2 - t2) ** 2)
    assert jnp.allclose(loss2, ref_loss2, rtol=1e-4, atol=1e-6), (loss2, ref_loss2)
    assert jnp.array_equal(out2, x2)

    print("KERNEL_OK")
</pallas_src>

<mosaic_0001>
module attributes {stable_mosaic.version = 11 : i64} {
  func.func @_mse_kernel(%arg0: i32, %arg1: memref<2x1024xf32, #tpu.memory_space<vmem>>, %arg2: memref<2x1024xf32, #tpu.memory_space<vmem>>, %arg3: memref<1x1xf32, #tpu.memory_space<vmem>>, %arg4: memref<2x1024xf32, #tpu.memory_space<vmem>>) attributes {dimension_semantics = [#tpu.dimension_semantics<arbitrary>], iteration_bounds = array<i64: 1>, scalar_prefetch = 0 : i64, scratch_operands = 1 : i64, tpu.core_type = #tpu.core_type<tc>, window_params = [{transform_indices = @transform_0, window_bounds = array<i64: 2, 1024>}, {transform_indices = @transform_1, window_bounds = array<i64: 2, 1024>}, {pipeline_mode = #tpu.pipeline_mode<synchronous>, transform_indices = @transform_2, window_bounds = array<i64: 1, 1>}]} {
    %c0_i32 = arith.constant 0 : i32
    %0 = arith.cmpi eq, %arg0, %c0_i32 : i32
    %1 = arith.extui %0 : i1 to i32
    %c0_i32_0 = arith.constant 0 : i32
    %2 = arith.cmpi ne, %1, %c0_i32_0 : i32
    scf.if %2 {
      %cst = arith.constant 0.000000e+00 : f32
      %13 = vector.broadcast %cst : f32 to vector<2x1024xf32>
      %c0_10 = arith.constant 0 : index
      %c0_11 = arith.constant 0 : index
      %14 = vector.load %arg4[%c0_10, %c0_11] : memref<2x1024xf32, #tpu.memory_space<vmem>>, vector<2x1024xf32>
      tpu.vector_store %arg4[%c0_10, %c0_11], %13 {strides = array<i32>} : memref<2x1024xf32, #tpu.memory_space<vmem>>, vector<2x1024xf32>,
    } else {
    }
    %c0 = arith.constant 0 : index
    %c0_1 = arith.constant 0 : index
    %3 = vector.load %arg1[%c0, %c0_1] : memref<2x1024xf32, #tpu.memory_space<vmem>>, vector<2x1024xf32>
    %c0_2 = arith.constant 0 : index
    %c0_3 = arith.constant 0 : index
    %4 = vector.load %arg2[%c0_2, %c0_3] : memref<2x1024xf32, #tpu.memory_space<vmem>>, vector<2x1024xf32>
    %5 = arith.subf %3, %4 : vector<2x1024xf32>
    %6 = arith.mulf %5, %5 : vector<2x1024xf32>
    %c0_4 = arith.constant 0 : index
    %c0_5 = arith.constant 0 : index
    %7 = vector.load %arg4[%c0_4, %c0_5] : memref<2x1024xf32, #tpu.memory_space<vmem>>, vector<2x1024xf32>
    %8 = arith.addf %7, %6 : vector<2x1024xf32>
    %c0_6 = arith.constant 0 : index
    %c0_7 = arith.constant 0 : index
    %9 = vector.load %arg4[%c0_6, %c0_7] : memref<2x1024xf32, #tpu.memory_space<vmem>>, vector<2x1024xf32>
    tpu.vector_store %arg4[%c0_6, %c0_7], %8 {strides = array<i32>} : memref<2x1024xf32, #tpu.memory_space<vmem>>, vector<2x1024xf32>,
    %c0_i32_8 = arith.constant 0 : i32
    %10 = arith.cmpi eq, %arg0, %c0_i32_8 : i32
    %11 = arith.extui %10 : i1 to i32
    %c0_i32_9 = arith.constant 0 : i32
    %12 = arith.cmpi ne, %11, %c0_i32_9 : i32
    scf.if %12 {
      %c0_10 = arith.constant 0 : index
      %c0_11 = arith.constant 0 : index
      %13 = vector.load %arg4[%c0_10, %c0_11] : memref<2x1024xf32, #tpu.memory_space<vmem>>, vector<2x1024xf32>
      %14 = vector.shape_cast %13 : vector<2x1024xf32> to vector<1x2x1024xf32>
      %cst = arith.constant dense<0.000000e+00> : vector<1xf32>
      %15 = vector.multi_reduction <add>, %14, %cst [1, 2] : vector<1x2x1024xf32> to vector<1xf32>
      %16 = vector.shape_cast %15 : vector<1xf32> to vector<1x1x1xf32>
      %17 = vector.extract %16[0, 0, 0] : f32 from vector<1x1x1xf32>
      %cst_12 = arith.constant 4.8828125E-4 : f32
      %18 = arith.mulf %17, %cst_12 : f32
      %19 = vector.broadcast %18 : f32 to vector<1x1xf32>
      %c0_13 = arith.constant 0 : index
      %c0_14 = arith.constant 0 : index
      %20 = vector.load %arg3[%c0_13, %c0_14] : memref<1x1xf32, #tpu.memory_space<vmem>>, vector<1x1xf32>
      tpu.vector_store %arg3[%c0_13, %c0_14], %19 {strides = array<i32>} : memref<1x1xf32, #tpu.memory_space<vmem>>, vector<1x1xf32>,
    } else {
    }
    return
  }
  func.func @transform_0(%arg0: i32) -> (i32, i32) {
    %c0_i32 = arith.constant 0 : i32
    %c0_i32_0 = arith.constant 0 : i32
    return %arg0, %c0_i32 : i32, i32
  }
  func.func @transform_1(%arg0: i32) -> (i32, i32) {
    %c0_i32 = arith.constant 0 : i32
    %c0_i32_0 = arith.constant 0 : i32
    return %arg0, %c0_i32 : i32, i32
  }
  func.func @transform_2(%arg0: i32) -> (i32, i32) {
    %c0_i32 = arith.constant 0 : i32
    %c0_i32_0 = arith.constant 0 : i32
    %c0_i32_1 = arith.constant 0 : i32
    return %c0_i32, %c0_i32_0 : i32, i32
  }
}

</mosaic_0001>

<bundles_post_ra>
// kernel: tpu_custom_call.1
= control target key start
LH: loop header
LB: loop body
LE: loop exit
PB: predicated region body
PF: predicated region fallthrough
CT: control target
= control target key end

     0   :  { %7 = vsyncpa [#allocation4], 0  ;;  %s258_s0 = inlined_call_operand.hbm [shape: f32[2,1024], index: 0, kind: input, shape index: {}]   ;;  %s259_s1 = inlined_call_operand.hbm [shape: f32[2,1024], index: 1, kind: input, shape index: {}]   ;;  %s260_s2 = inlined_call_operand.hbm [shape: f32[1,1], index: 2, kind: output, shape index: {}]  }
   0x1   :  { %8 = vsyncpa [#allocation7], 0 }
   0x2   :  { %9 = vsyncpa [#allocation5], 0  ;;  %s222_s9 = smov [#allocation3]   ;;  %s223_s11 = smov [#allocation6]  }
   0x3   :  { %s16_s10 = sshll.u32 %s222_s9, 4  ;;  %s26_s12 = sshll.u32 %s223_s11, 4  ;;  %s17_s10 = int_to_ptr.vmem [resolvable:$true] %s16_s10  ;;  %s27_s12 = int_to_ptr.vmem [resolvable:$true] %s26_s12 }
   0x4   :  { %s164_s13 = scalar_lea.vmem %s17_s10, 256  ;;  %p169_p1 = scmp.lt.s32.totalorder %s17_s10, %s17_s10 }
   0x5   :  { %p165_p0 = scmp.ne.s32.totalorder %s17_s10, %s164_s13  ;;  %p170_p2 = scmp.lt.s32.totalorder %s164_s13, %s164_s13 }
   0x7   :  { %p171_p3 = por %p170_p2, %p169_p1 }
   0x9   :  { %p172_p4 = pnand %p171_p3, %p165_p0 }
   0xb   :  { %175 = shalt.err (!%p172_p4)
}
   0xc   :  { %19 = dma.hbm_to_vmem [thread:$0]  %s258_s0, 256, %s17_s10, [#allocation4]  }
   0xd   :  { %s184_s16 = scalar_lea.vmem %s27_s12, 256  ;;  %p189_p6 = scmp.lt.s32.totalorder %s27_s12, %s27_s12 }
   0xe   :  { %p185_p5 = scmp.ne.s32.totalorder %s27_s12, %s184_s16  ;;  %p190_p7 = scmp.lt.s32.totalorder %s184_s16, %s184_s16 }
  0x10   :  { %p191_p8 = por %p190_p7, %p189_p6 }
  0x12   :  { %p192_p9 = pnand %p191_p8, %p185_p5 }
  0x14   :  { %195 = shalt.err (!%p192_p9)
}
  0x15   :  { %29 = dma.hbm_to_vmem [thread:$0]  %s259_s1, 256, %s27_s12, [#allocation7]  }
  0x16   :  { %216 = dma.done.wait [#allocation4], 256  }
  0x17   :  { %217 = vsyncadd [#allocation4], 4294967040 }
  0x18   :  { %218 = dma.done.wait [#allocation7], 256  }
  0x19   :  { %219 = vsyncadd [#allocation7], 4294967040  ;;  %v67_v0 = vlaneseq  ;;  %v224_v1 = vmov 1983009808   ;;  %v42_v5 = vld [vmem:[#allocation3] sm:$0xff]  ;;  %v43_v6 = vld [vmem:[#allocation3 + $0x8] sm:$0xff] }
  0x1a   :  { %v65_v2 = vunpack.c.l.s4 %v224_v1  ;;  %v44_v7 = vld [vmem:[#allocation6] sm:$0xff]  ;;  %v45_v8 = vld [vmem:[#allocation6 + $0x8] sm:$0xff]  ;;  %vm105_vm0 = vcmask 1041408   ;;  %s225_s0 = smov [#allocation8]   ;;  %vm132_vm1 = vcmask 0  }
  0x1b   :  { %v68_v4 = vshrl.u32 %v67_v0, 7  ;;  %v46_v9 = vsub.f32 %v42_v5, %v44_v7  ;;  %v47_v11 = vsub.f32 %v43_v6, %v45_v8  ;;  %s140_s1 = sshll.u32 %s225_s0, 4  ;;  %s141_s1 = int_to_ptr.vmem [resolvable:$true] %s140_s1 }
  0x1c   :  { %v66_v3 = vunpack.c.0.s8 %v65_v2  ;;  %s196_s21 = scalar_lea.vmem %s141_s1, 16  ;;  %s200_s22 = scalar_lea.vmem %s141_s1, 32 }
  0x1d   :  { %v48_v12 = vmul.f32 %v46_v9, %v46_v9  ;;  %v49_v13 = vmul.f32 %v47_v11, %v47_v11  ;;  %p197_p10 = scmp.ne.s32.totalorder %s141_s1, %s196_s21  ;;  %p201_p11 = scmp.lt.s32.totalorder %s141_s1, %s141_s1 }
  0x1e   :  { %v69_v10 = vsub.s32 %v66_v3, %v68_v4  ;;  %p202_p12 = scmp.lt.s32.totalorder %s200_s22, %s196_s21 }
  0x1f   :  { %v63_v14 = vcombine.high %v48_v12, %v48_v12  ;;  %v80_v16 = vcombine.high %v49_v13, %v49_v13 }
  0x20   :  { %v70_v15 = vrot.slane %v48_v12, %v69_v10  ;;  %v87_v19 = vrot.slane %v49_v13, %v69_v10  ;;  %p203_p13 = por %p202_p12, %p201_p11 }
  0x21   :  { %v77_v17 = vrot.slane %v63_v14, %v69_v10  ;;  %v94_v25 = vrot.slane %v80_v16, %v69_v10 }
  0x22   :  { %v78_v18 = vcombine.high %v70_v15, %v70_v15  ;;  %v106_v20 = vsel %vm105_vm0, %v70_v15, 0.0  ;;  %v95_v26 = vcombine.high %v87_v19, %v87_v19  ;;  %v113_v29 = vsel %vm105_vm0, %v87_v19, 0.0  ;;  %p204_p0 = pnand %p203_p13, %p197_p10 }
  0x23   :  { %v79_v21 = vcombine.high %v77_v17, %v77_v17  ;;  %v109_v23 = vsel %vm105_vm0, %v77_v17, 0.0  ;;  %v96_v31 = vcombine.high %v94_v25, %v94_v25  ;;  %v117_v34 = vsel %vm105_vm0, %v94_v25, 0.0 }
  0x24   :  { %v107_v22 = vsel %vm105_vm0, %v78_v18, 0.0  ;;  %v115_v32 = vsel %vm105_vm0, %v95_v26, 0.0 }
  0x25   :  { %v108_v24 = vadd.f32 %v107_v22, %v106_v20  ;;  %v111_v27 = vsel %vm105_vm0, %v79_v21, 0.0  ;;  %v119_v36 = vsel %vm105_vm0, %v96_v31, 0.0 }
  0x27   :  { %v110_v28 = vadd.f32 %v109_v23, %v108_v24 }
  0x29   :  { %v112_v30 = vadd.f32 %v111_v27, %v110_v28 }
  0x2b   :  { %v114_v33 = vadd.f32 %v113_v29, %v112_v30 }
  0x2d   :  { %v116_v35 = vadd.f32 %v115_v32, %v114_v33 }
  0x2f   :  { %v118_v37 = vadd.f32 %v117_v34, %v116_v35 }
  0x31   :  { %v120_v38 = vadd.f32 %v119_v36, %v118_v37 }
  0x33   :  { %121 = vadd.xlane.f32.xlu0 %v120_v38 }
  0xbc   :  { %v122_v39 = vpop.xlane.xlu0 %121 }
  0xbd   :  { %v123_v40 = vrot.slane %v122_v39, 4 }
  0xbf   :  { %v124_v41 = vadd.f32 %v123_v40, %v122_v39 }
  0xc1   :  { %v125_v42 = vrot.slane %v124_v41, 2 }
  0xc3   :  { %v126_v43 = vadd.f32 %v125_v42, %v124_v41 }
  0xc5   :  { %v127_v44 = vrot.slane %v126_v43, 1 }
  0xc7   :  { %v128_v45 = vadd.f32 %v127_v44, %v126_v43 }
  0xc9   :  { %150 = vpush %v128_v45 }
  0xfa   :  { %s151_s19 = spop %150 }
  0xfb   :  { %s130_s20 = smul.f32 0.00048828125, %s151_s19 }
  0xfd   :  { %v131_v46 = vstv %s130_s20 }
  0xfe   :  { %133 = vst.msk [vmem:[#allocation8] sm:$0x1] %vm132_vm1, %v131_v46 }
  0xff   :  { %207 = shalt.err (!%p204_p0)
}
 0x100   :  { %143 = dma.vmem_to_hbm [thread:$0]  %s141_s1, 16, %s260_s2, [#allocation5]  }
 0x101   :  { %220 = dma.done.wait [#allocation5], 16  }
 0x102   :  { %221 = vsyncadd [#allocation5], 4294967280 }
 0x103   :  { %147 = vsyncpa [#allocation4], 1 }
 0x104   :  { %148 = vsyncpa [#allocation7], 1 }
 0x105   :  { %149 = vsyncpa [#allocation5], 1 }

</bundles_post_ra>
